<compile_context>
chip_gen: v7x
topology: tpu7x:2x2x1
jax: 0.10.0
libtpu: 0.0.40
codegen_flags: <defaults>
</compile_context>

<pallas_src>
import functools

import jax
import jax.numpy as jnp
from jax import lax
from jax.experimental import pallas as pl
from jax.experimental.pallas import tpu as pltpu


# ---------------------------------------------------------------------------
# Hardware info (generation-aware tiling / VMEM budgets).
# ---------------------------------------------------------------------------
def _tpu_hw_info():
    vmem_cap = None
    try:
        vmem_cap = int(pltpu.get_tpu_info().vmem_capacity_bytes)
    except Exception:
        vmem_cap = None
    try:
        kind = jax.devices()[0].device_kind.lower()
    except Exception:
        kind = ""
    if vmem_cap is None:
        if "v7" in kind:
            vmem_cap = 64 * 1024 * 1024
        elif "v2" in kind or "v3" in kind:
            vmem_cap = 16 * 1024 * 1024
        else:
            vmem_cap = 128 * 1024 * 1024          # v4 / v5e / v6e
    # Chips with 2 TensorCores benefit from a grid of >= 2 "parallel" steps.
    num_cores = 2 if any(k in kind for k in ("v7", "v5p", "v4")) else 1
    return vmem_cap, num_cores


def _single_pass_footprint(tile_elems, itemsize):
    # Double-buffered native input + double-buffered native output
    # + ~3 f32-sized temporaries (xf, xf*xf, pre-cast product).
    return tile_elems * (4 * itemsize + 3 * 4)


# ---------------------------------------------------------------------------
# Kernels
# ---------------------------------------------------------------------------
def _group_norm_kernel(x_ref, ss_ref, o_ref, *, eps, inv_n):
    """Fused single-pass GroupNorm over TG full rows (one group per row)."""
    xf = x_ref[...].astype(jnp.float32)                   # (TG, row_len)
    s = jnp.sum(xf, axis=-1, keepdims=True)               # (TG, 1)
    sq = jnp.sum(xf * xf, axis=-1, keepdims=True)         # (TG, 1)
    mean = s * inv_n
    # E[x^2] - mean^2 fused form; clamp >= 0 against catastrophic cancellation.
    var = jnp.maximum(sq * inv_n - mean * mean, 0.0)
    inv_std = lax.rsqrt(var + eps)
    a = inv_std * ss_ref[:, 0:1]                          # scale
    c = ss_ref[:, 1:2] - mean * a                         # shift - mean * a
    # NOTE: when rows % TG != 0 the edge tile computes stats on padded/stale
    # rows; Pallas masks the out-of-range stores, so valid outputs are fine.
    o_ref[...] = (xf * a + c).astype(o_ref.dtype)


def _stats_kernel(x_ref, stats_ref, sum_sc, sq_sc, *, tc, row_len, mask_cols):
    """Column-split stats pass: accumulate per-row sum / sum-of-squares."""
    j = pl.program_id(1)

    @pl.when(j == 0)
    def _():
        sum_sc[...] = jnp.zeros_like(sum_sc)
        sq_sc[...] = jnp.zeros_like(sq_sc)

    xf = x_ref[...].astype(jnp.float32)
    if mask_cols:  # static flag: only when row_len % tc != 0 (masked edge chunk)
        col = j * tc + lax.broadcasted_iota(jnp.int32, xf.shape, 1)
        xf = jnp.where(col < row_len, xf, 0.0)
    sum_sc[...] += jnp.sum(xf, axis=-1, keepdims=True)
    sq_sc[...] += jnp.sum(xf * xf, axis=-1, keepdims=True)

    @pl.when(j == pl.num_programs(1) - 1)
    def _():
        stats_ref[:, 0:1] = sum_sc[...]
        stats_ref[:, 1:2] = sq_sc[...]


def _apply_kernel(x_ref, ac_ref, o_ref):
    """Column-split normalize pass: y = x * a + c (per-row a, c)."""
    xf = x_ref[...].astype(jnp.float32)
    o_ref[...] = (xf * ac_ref[:, 0:1] + ac_ref[:, 1:2]).astype(o_ref.dtype)


# ---------------------------------------------------------------------------
# Tiling choice
# ---------------------------------------------------------------------------
def _choose_row_tile(rows, max_tg, sub, min_tiles):
    """Rows per tile for the fused path, or None -> use the column-split path."""
    if min_tiles > 1 and rows >= min_tiles * sub:
        # Cap TG so the grid has >= min_tiles steps (megacore sharding on v7x).
        max_tg = min(max_tg, rows // min_tiles)
    if max_tg >= rows:
        return rows                                # full extent: always legal
    if max_tg < 8:
        return None                                # even 8 rows blow the budget
    # Prefer a sublane-packing-aligned divisor of rows (no masked edge tile).
    for align in (sub, 8):
        start = (max_tg // align) * align
        for tg in range(start, 0, -align):
            if rows % tg == 0:
                return tg
    # Aligned tile with a masked edge block (rows are independent).
    if max_tg >= sub:
        return (max_tg // sub) * sub
    return (max_tg // 8) * 8


# ---------------------------------------------------------------------------
# Wrappers
# ---------------------------------------------------------------------------
def _group_norm_fused(x2, scale_rows, shift_rows, tg, rows, row_len,
                      itemsize, inv_n, eps, vmem_budget):
    ss = jnp.concatenate([scale_rows, shift_rows], axis=-1)   # (rows, 2) f32
    grid = (pl.cdiv(rows, tg),)
    footprint = _single_pass_footprint(tg * row_len, itemsize) + (1 << 20)
    vmem_limit = int(min(vmem_budget, max(32 << 20, footprint + (2 << 20))))

    kernel = functools.partial(_group_norm_kernel, eps=eps, inv_n=inv_n)
    cost = pl.CostEstimate(
        flops=6 * rows * row_len,
        transcendentals=rows,
        bytes_accessed=2 * rows * row_len * itemsize,
    )
    return pl.pallas_call(
        kernel,
        out_shape=jax.ShapeDtypeStruct((rows, row_len), x2.dtype),
        grid=grid,
        in_specs=[
            pl.BlockSpec((tg, row_len), lambda i: (i, 0)),   # lane-dense x tile
            pl.BlockSpec((tg, 2), lambda i: (i, 0)),         # per-row (scale, shift)
        ],
        out_specs=pl.BlockSpec((tg, row_len), lambda i: (i, 0)),
        compiler_params=pltpu.CompilerParams(
            dimension_semantics=("parallel",),
            vmem_limit_bytes=vmem_limit),
        cost_estimate=cost,
    )(x2, ss)


def _group_norm_split(x2, scale_rows, shift_rows, rows, row_len,
                      itemsize, inv_n, eps, vmem_budget, row_tile_bytes, sub):
    # Row tile: all rows if they fit a sublane group, else one sublane group.
    tr = rows if rows <= sub else sub
    # Column chunk: multiple of 128 within both the byte budget and VMEM.
    per_col_fp = tr * (4 * itemsize + 3 * 4)
    tc_max = min(row_tile_bytes // max(1, tr * itemsize),
                 (vmem_budget - (2 << 20)) // max(1, per_col_fp))
    tc_max = max(128, (tc_max // 128) * 128)
    if row_len <= tc_max:
        tc = row_len                       # whole row fits one chunk
    else:
        tc = tc_max
        if row_len % 128 == 0:
            for cand in range(tc_max, 127, -128):
                if row_len % cand == 0:    # avoid edge-column masking
                    tc = cand
                    break
    mask_cols = (row_len % tc) != 0
    n_row = pl.cdiv(rows, tr)
    n_col = pl.cdiv(row_len, tc)

    # ---- pass 1: per-row sum / sum-of-squares ----------------------------
    stats_fp = tr * tc * (2 * itemsize + 2 * 4) + (1 << 20)
    stats_vmem = int(min(vmem_budget, max(32 << 20, stats_fp + (2 << 20))))
    stats = pl.pallas_call(
        functools.partial(_stats_kernel, tc=tc, row_len=row_len,
                          mask_cols=mask_cols),
        out_shape=jax.ShapeDtypeStruct((rows, 2), jnp.float32),
        grid=(n_row, n_col),
        in_specs=[pl.BlockSpec((tr, tc), lambda i, j: (i, j))],
        out_specs=pl.BlockSpec((tr, 2), lambda i, j: (i, 0)),
        scratch_shapes=[pltpu.VMEM((tr, 1), jnp.float32),
                        pltpu.VMEM((tr, 1), jnp.float32)],
        compiler_params=pltpu.CompilerParams(
            dimension_semantics=("parallel", "arbitrary"),
            vmem_limit_bytes=stats_vmem),
        cost_estimate=pl.CostEstimate(
            flops=3 * rows * row_len, transcendentals=0,
            bytes_accessed=rows * row_len * itemsize),
    )(x2)

    # Finalize per-row affine outside the kernel (tiny: `rows` elements).
    mean = stats[:, 0:1] * inv_n
    var = jnp.maximum(stats[:, 1:2] * inv_n - mean * mean, 0.0)
    inv_std = lax.rsqrt(var + eps)
    a = inv_std * scale_rows
    c = shift_rows - mean * a
    ac = jnp.concatenate([a, c], axis=-1)                    # (rows, 2) f32

    # ---- pass 2: streaming normalize --------------------------------------
    norm_fp = tr * tc * (4 * itemsize + 2 * 4) + (1 << 20)
    norm_vmem = int(min(vmem_budget, max(32 << 20, norm_fp + (2 << 20))))
    return pl.pallas_call(
        _apply_kernel,
        out_shape=jax.ShapeDtypeStruct((rows, row_len), x2.dtype),
        grid=(n_row, n_col),
        in_specs=[pl.BlockSpec((tr, tc), lambda i, j: (i, j)),
                  pl.BlockSpec((tr, 2), lambda i, j: (i, 0))],
        out_specs=pl.BlockSpec((tr, tc), lambda i, j: (i, j)),
        compiler_params=pltpu.CompilerParams(
            dimension_semantics=("parallel", "parallel"),
            vmem_limit_bytes=norm_vmem),
        cost_estimate=pl.CostEstimate(
            flops=2 * rows * row_len, transcendentals=0,
            bytes_accessed=2 * rows * row_len * itemsize),
    )(x2, ac)


def group_norm(x, scale, shift, *, channels_per_group=4, eps=1e-8,
               row_tile_bytes=None):
    """GroupNorm forward matching the PyTorch module semantics.

    x:     (b, ch, h, w)  NCHW
    scale: (num_groups,)  per-group scale
    shift: (num_groups,)  per-group shift
    row_tile_bytes: approx bytes of the *native-dtype* x tile per grid step
                    (None -> derived from the chip's VMEM capacity).
    """
    b, ch, h, w = x.shape
    cpg = min(channels_per_group, ch)
    assert ch % cpg == 0, "ch must be a multiple of channels_per_group"
    num_groups = ch // cpg

    rows = b * num_groups
    row_len = cpg * h * w
    itemsize = jnp.dtype(x.dtype).itemsize
    inv_n = 1.0 / float(row_len)
    eps = float(eps)

    vmem_cap, num_cores = _tpu_hw_info()
    vmem_budget = (3 * vmem_cap) // 4             # headroom under physical VMEM
    if row_tile_bytes is None:
        # ~4 MiB native tiles on v7x (64 MiB VMEM), ~8 MiB on v5e/v6e (128 MiB).
        row_tile_bytes = max(512 * 1024, vmem_cap // 16)
    # Sublane-packing multiple: 8 (f32) / 16 (bf16) / 32 (int8 / fp8).
    sub = 8 * max(1, 4 // itemsize)

    # Flatten: row r corresponds to (batch r // num_groups, group r % num_groups).
    x2 = x.reshape(rows, row_len)
    scale_rows = jnp.tile(scale.astype(jnp.float32), (b,)).reshape(rows, 1)
    shift_rows = jnp.tile(shift.astype(jnp.float32), (b,)).reshape(rows, 1)

    per_row_native = row_len * itemsize
    per_row_fp = _single_pass_footprint(row_len, itemsize)
    max_tg = min(row_tile_bytes // max(1, per_row_native),
                 (vmem_budget - (2 << 20)) // max(1, per_row_fp))
    min_tiles = 2 if num_cores >= 2 else 1
    tg = _choose_row_tile(rows, max_tg, sub, min_tiles)

    if tg is not None:
        out = _group_norm_fused(x2, scale_rows, shift_rows, tg, rows, row_len,
                                itemsize, inv_n, eps, vmem_budget)
    else:
        out = _group_norm_split(x2, scale_rows, shift_rows, rows, row_len,
                                itemsize, inv_n, eps, vmem_budget,
                                row_tile_bytes, sub)
    return out.reshape(b, ch, h, w)


def group_norm_reference(x, scale, shift, *, channels_per_group=4, eps=1e-8):
    b, ch, h, w = x.shape
    cpg = min(channels_per_group, ch)
    num_groups = ch // cpg
    out = x.reshape(b, num_groups, cpg * h * w).astype(jnp.float32)
    mean = out.mean(axis=-1, keepdims=True)
    var = out.var(axis=-1, keepdims=True)  # biased, like unbiased=False
    out = (out - mean) / jnp.sqrt(var + eps)
    out = out * scale.reshape(1, num_groups, 1).astype(jnp.float32)
    out = out + shift.reshape(1, num_groups, 1).astype(jnp.float32)
    return out.reshape(b, ch, h, w).astype(x.dtype)


if __name__ == "__main__":
    key = jax.random.PRNGKey(0)
    keys = jax.random.split(key, 12)

    def check(name, kx, ks, kb, shape, cpg, dtype=jnp.float32, **kw):
        b, ch, h, w = shape
        ng = ch // min(cpg, ch)
        x = jax.random.normal(kx, shape, dtype=jnp.float32).astype(dtype)
        scale = 1.0 + 0.1 * jax.random.normal(ks, (ng,), dtype=jnp.float32)
        shift = 0.1 * jax.random.normal(kb, (ng,), dtype=jnp.float32)
        y = jax.block_until_ready(
            group_norm(x, scale, shift, channels_per_group=cpg, eps=1e-8, **kw))
        y_ref = group_norm_reference(x, scale, shift,
                                     channels_per_group=cpg, eps=1e-8)
        tol = 1e-5 if dtype == jnp.float32 else 5e-2
        assert jnp.allclose(y.astype(jnp.float32), y_ref.astype(jnp.float32),
                            atol=tol, rtol=tol), f"mismatch ({name})"

    # 1) small shape, fused path, TG == rows (grid possibly 1).
    check("small-fused", keys[0], keys[1], keys[2], (2, 8, 16, 16), 4)

    # 2) multi-row tiles + multi-step grid on the fused path (forced tiny tile).
    check("multi-tile-fused", keys[3], keys[4], keys[5], (4, 32, 16, 16), 4,
          row_tile_bytes=32 * 1024)

    # 3) column-split path (rows don't fit the forced byte budget).
    check("column-split", keys[6], keys[7], keys[8], (2, 8, 64, 64), 4,
          row_tile_bytes=16 * 1024)

    # 4) bf16 input exercising the sublane-packing-aware tiling / f32 accum.
    check("bf16-fused", keys[9], keys[10], keys[11], (2, 8, 16, 16), 4,
          dtype=jnp.bfloat16)

    print("KERNEL_OK")
</pallas_src>

<mosaic_0001>
module attributes {stable_mosaic.version = 11 : i64} {
  func.func @_group_norm_kernel(%arg0: i32, %arg1: memref<4x1024xf32, #tpu.memory_space<vmem>>, %arg2: memref<4x2xf32, #tpu.memory_space<vmem>>, %arg3: memref<4x1024xf32, #tpu.memory_space<vmem>>) attributes {dimension_semantics = [#tpu.dimension_semantics<parallel>], iteration_bounds = array<i64: 1>, scalar_prefetch = 0 : i64, scratch_operands = 0 : i64, tpu.core_type = #tpu.core_type<tc>, window_params = [{transform_indices = @transform_0, window_bounds = array<i64: 4, 1024>}, {transform_indices = @transform_1, window_bounds = array<i64: 4, 2>}, {transform_indices = @transform_2, window_bounds = array<i64: 4, 1024>}]} {
    %c0 = arith.constant 0 : index
    %c0_0 = arith.constant 0 : index
    %0 = vector.load %arg1[%c0, %c0_0] : memref<4x1024xf32, #tpu.memory_space<vmem>>, vector<4x1024xf32>
    %cst = arith.constant dense<0.000000e+00> : vector<4xf32>
    %1 = vector.multi_reduction <add>, %0, %cst [1] : vector<4x1024xf32> to vector<4xf32>
    %2 = vector.shape_cast %1 : vector<4xf32> to vector<4x1xf32>
    %3 = arith.mulf %0, %0 : vector<4x1024xf32>
    %cst_1 = arith.constant dense<0.000000e+00> : vector<4xf32>
    %4 = vector.multi_reduction <add>, %3, %cst_1 [1] : vector<4x1024xf32> to vector<4xf32>
    %5 = vector.shape_cast %4 : vector<4xf32> to vector<4x1xf32>
    %cst_2 = arith.constant 9.765625E-4 : f32
    %6 = vector.broadcast %cst_2 : f32 to vector<4x1xf32>
    %7 = arith.mulf %2, %6 : vector<4x1xf32>
    %cst_3 = arith.constant 9.765625E-4 : f32
    %8 = vector.broadcast %cst_3 : f32 to vector<4x1xf32>
    %9 = arith.mulf %5, %8 : vector<4x1xf32>
    %10 = arith.mulf %7, %7 : vector<4x1xf32>
    %11 = arith.subf %9, %10 : vector<4x1xf32>
    %cst_4 = arith.constant 0.000000e+00 : f32
    %12 = vector.broadcast %cst_4 : f32 to vector<4x1xf32>
    %13 = arith.maximumf %11, %12 : vector<4x1xf32>
    %cst_5 = arith.constant 9.99999993E-9 : f32
    %14 = vector.broadcast %cst_5 : f32 to vector<4x1xf32>
    %15 = arith.addf %13, %14 : vector<4x1xf32>
    %16 = math.rsqrt %15 : vector<4x1xf32>
    %c0_6 = arith.constant 0 : index
    %c0_7 = arith.constant 0 : index
    %17 = vector.load %arg2[%c0_6, %c0_7] : memref<4x2xf32, #tpu.memory_space<vmem>>, vector<4x1xf32>
    %18 = arith.mulf %16, %17 : vector<4x1xf32>
    %c0_8 = arith.constant 0 : index
    %c1 = arith.constant 1 : index
    %19 = vector.load %arg2[%c0_8, %c1] : memref<4x2xf32, #tpu.memory_space<vmem>>, vector<4x1xf32>
    %20 = arith.mulf %7, %18 : vector<4x1xf32>
    %21 = arith.subf %19, %20 : vector<4x1xf32>
    %22 = vector.broadcast %18 : vector<4x1xf32> to vector<4x1024xf32>
    %23 = arith.mulf %0, %22 : vector<4x1024xf32>
    %24 = vector.broadcast %21 : vector<4x1xf32> to vector<4x1024xf32>
    %25 = arith.addf %23, %24 : vector<4x1024xf32>
    %c0_9 = arith.constant 0 : index
    %c0_10 = arith.constant 0 : index
    %26 = vector.load %arg3[%c0_9, %c0_10] : memref<4x1024xf32, #tpu.memory_space<vmem>>, vector<4x1024xf32>
    tpu.vector_store %arg3[%c0_9, %c0_10], %25 {strides = array<i32>} : memref<4x1024xf32, #tpu.memory_space<vmem>>, vector<4x1024xf32>,
    return
  }
  func.func @transform_0(%arg0: i32) -> (i32, i32) {
    %c0_i32 = arith.constant 0 : i32
    %c0_i32_0 = arith.constant 0 : i32
    return %arg0, %c0_i32 : i32, i32
  }
  func.func @transform_1(%arg0: i32) -> (i32, i32) {
    %c0_i32 = arith.constant 0 : i32
    %c0_i32_0 = arith.constant 0 : i32
    return %arg0, %c0_i32 : i32, i32
  }
  func.func @transform_2(%arg0: i32) -> (i32, i32) {
    %c0_i32 = arith.constant 0 : i32
    %c0_i32_0 = arith.constant 0 : i32
    return %arg0, %c0_i32 : i32, i32
  }
}

</mosaic_0001>

<bundles_post_ra>
// kernel: tpu_custom_call.1
= control target key start
LH: loop header
LB: loop body
LE: loop exit
PB: predicated region body
PF: predicated region fallthrough
CT: control target
= control target key end

     0   :  { %7 = vsyncpa [#allocation3], 0  ;;  %s315_s0 = inlined_call_operand.hbm [shape: f32[4,1024], index: 0, kind: input, shape index: {}]   ;;  %s316_s1 = inlined_call_operand.vmem [shape: f32[4,2], index: 1, kind: input, shape index: {}]   ;;  %s317_s2 = inlined_call_operand.hbm [shape: f32[4,1024], index: 2, kind: output, shape index: {}]  }
   0x1   :  { %8 = vsyncpa [#allocation4], 0  ;;  %s219_s9 = smov [#allocation2]   ;;  %s171_s13 = scalar_lea.hbm %s315_s0, 512 }
   0x2   :  { %s15_s10 = sshll.u32 %s219_s9, 4  ;;  %p172_p0 = scmp.ne.s32.totalorder %s315_s0, %s171_s13  ;;  %s16_s10 = int_to_ptr.vmem [resolvable:$true] %s15_s10 }
   0x3   :  { %p175_p1 = scmp.lt.u32.totalorder %s171_s13, %s315_s0 }
   0x5   :  { %p177_p2 = pnand %p175_p1, %p172_p0 }
   0x7   :  { %180 = shalt.err (!%p177_p2)
}
   0x8   :  { %s181_s18 = scalar_lea.vmem %s16_s10, 512  ;;  %p186_p4 = scmp.lt.s32.totalorder %s16_s10, %s16_s10 }
   0x9   :  { %p182_p3 = scmp.ne.s32.totalorder %s16_s10, %s181_s18  ;;  %p187_p5 = scmp.lt.s32.totalorder %s181_s18, %s181_s18 }
   0xb   :  { %p188_p6 = por %p187_p5, %p186_p4 }
   0xd   :  { %p189_p7 = pnand %p188_p6, %p182_p3 }
   0xf   :  { %192 = shalt.err (!%p189_p7)
}
  0x10   :  { %18 = dma.hbm_to_vmem [thread:$0]  %s315_s0, 512, %s16_s10, [#allocation3]  }
  0x11   :  { %215 = dma.done.wait [#allocation3], 512  }
  0x12   :  { %216 = vsyncadd [#allocation3], 4294966784  ;;  %vm40_vm0 = vcmask 1043456   ;;  %v252_v0 = vld [vmem:[#allocation2] sm:$0xff]  ;;  %v254_v1 = vld [vmem:[#allocation2 + $0x8] sm:$0xff]  ;;  %v220_v46 = vmov 0  }
  0x13   :  { %v256_v2 = vld [vmem:[#allocation2 + $0x10] sm:$0xff]  ;;  %v32_v3 = vcombine.high %v252_v0, %v252_v0  ;;  %v33_v4 = vcombine.high %v254_v1, %v254_v1  ;;  %v41_v5 = vsel %vm40_vm0, %v252_v0, 0.0  ;;  %v44_v7 = vsel %vm40_vm0, %v254_v1, 0.0  ;;  %v273_v12 = vld [vmem:[#allocation2 + $0x18] sm:$0xff]  ;;  %163 = vset.pattern.permute.xlu1 %v220_v46  ;;  %v98_v56 = vld [vmem:[%s316_s1] sm:$0xf] }
  0x14   :  { %v58_v8 = vmul.f32 %v252_v0, %v252_v0  ;;  %v34_v9 = vcombine.high %v256_v2, %v256_v2  ;;  %v59_v11 = vmul.f32 %v254_v1, %v254_v1  ;;  %v60_v14 = vmul.f32 %v256_v2, %v256_v2  ;;  %s222_s22 = smov 1   ;;  %s224_s1 = smov [#allocation5]  }
  0x15   :  { %v42_v6 = vsel %vm40_vm0, %v32_v3, 0.0  ;;  %v46_v13 = vsel %vm40_vm0, %v33_v4, 0.0  ;;  %v48_v19 = vsel %vm40_vm0, %v256_v2, 0.0  ;;  %v35_v22 = vcombine.high %v273_v12, %v273_v12  ;;  %s148_s23 = sshll.u32 %s224_s1, 4  ;;  %s149_s23 = int_to_ptr.vmem [resolvable:$true] %s148_s23 }
  0x16   :  { %v43_v10 = vadd.f32 %v42_v6, %v41_v5  ;;  %v66_v15 = vcombine.high %v58_v8, %v58_v8  ;;  %v74_v16 = vsel %vm40_vm0, %v58_v8, 0.0  ;;  %v67_v18 = vcombine.high %v59_v11, %v59_v11  ;;  %s193_s24 = scalar_lea.vmem %s149_s23, 512  ;;  %p198_p9 = scmp.lt.s32.totalorder %s149_s23, %s149_s23 }
  0x17   :  { %v77_v21 = vsel %vm40_vm0, %v59_v11, 0.0  ;;  %v50_v25 = vsel %vm40_vm0, %v34_v9, 0.0  ;;  %v61_v26 = vmul.f32 %v273_v12, %v273_v12  ;;  %v68_v27 = vcombine.high %v60_v14, %v60_v14  ;;  %p194_p8 = scmp.ne.s32.totalorder %s149_s23, %s193_s24  ;;  %p199_p10 = scmp.lt.s32.totalorder %s193_s24, %s193_s24 }
  0x18   :  { %v45_v17 = vadd.f32 %v44_v7, %v43_v10  ;;  %v75_v20 = vsel %vm40_vm0, %v66_v15, 0.0  ;;  %v79_v28 = vsel %vm40_vm0, %v67_v18, 0.0  ;;  %v52_v31 = vsel %vm40_vm0, %v273_v12, 0.0 }
  0x19   :  { %v76_v24 = vadd.f32 %v75_v20, %v74_v16  ;;  %v81_v32 = vsel %vm40_vm0, %v60_v14, 0.0  ;;  %v54_v35 = vsel %vm40_vm0, %v35_v22, 0.0  ;;  %v69_v36 = vcombine.high %v61_v26, %v61_v26  ;;  %p200_p11 = por %p199_p10, %p198_p9 }
  0x1a   :  { %v47_v23 = vadd.f32 %v46_v13, %v45_v17  ;;  %v83_v37 = vsel %vm40_vm0, %v68_v27, 0.0  ;;  %v85_v40 = vsel %vm40_vm0, %v61_v26, 0.0  ;;  %v221_v55 = vmov 1  }
  0x1b   :  { %v78_v30 = vadd.f32 %v77_v21, %v76_v24  ;;  %v87_v43 = vsel %vm40_vm0, %v69_v36, 0.0  ;;  %164 = vset.pattern.permute.xlu0 %v221_v55  ;;  %v223_v62 = vmov 839922192   ;;  %v113_v3 = vlaneseq  ;;  %p201_p12 = pnand %p200_p11, %p194_p8 }
  0x1c   :  { %v49_v29 = vadd.f32 %v48_v19, %v47_v23  ;;  %v111_v63 = vunpack.c.l.s4 %v223_v62 }
  0x1d   :  { %v80_v34 = vadd.f32 %v79_v28, %v78_v30  ;;  %v114_v5 = vshrl.u32 %v113_v3, 7 }
  0x1e   :  { %v51_v33 = vadd.f32 %v50_v25, %v49_v29  ;;  %v112_v4 = vunpack.c.0.s8 %v111_v63 }
  0x1f   :  { %v82_v39 = vadd.f32 %v81_v32, %v80_v34 }
  0x20   :  { %v53_v38 = vadd.f32 %v52_v31, %v51_v33  ;;  %v115_v6 = vsub.s32 %v112_v4, %v114_v5 }
  0x21   :  { %v84_v42 = vadd.f32 %v83_v37, %v82_v39 }
  0x22   :  { %v55_v41 = vadd.f32 %v54_v35, %v53_v38 }
  0x23   :  { %v86_v44 = vadd.f32 %v85_v40, %v84_v42 }
  0x24   :  { %56 = vadd.xlane.f32.xlu0 %v55_v41 }
  0x25   :  { %v88_v45 = vadd.f32 %v87_v43, %v86_v44 }
  0x28   :  { %89 = vadd.xlane.f32.xlu0 %v88_v45 }
  0xb1   :  { %v57_v47 = vpop.xlane.xlu0 %56 }
  0xb2   :  { %v91_v48 = vmul.f32 0.0009765625, %v57_v47 }
  0xb4   :  { %v93_v50 = vmul.f32 %v91_v48, %v91_v48 }
  0xb5   :  { %v90_v49 = vpop.xlane.xlu0 %89 }
  0xb6   :  { %v92_v51 = vmul.f32 0.0009765625, %v90_v49 }
  0xb8   :  { %v94_v52 = vsub.f32 %v92_v51, %v93_v50 }
  0xba   :  { %v95_v53 = vmax.f32 %v94_v52, 0.0 }
  0xbc   :  { %v96_v54 = vadd.f32 1e-08, %v95_v53 }
  0xbe   :  { %169 = vrsqrt.f32 %v96_v54 }
  0xc8   :  { %v170_v57 = vpop.eup %169 }
  0xc9   :  { %v99_v58 = vmul.f32 %v170_v57, %v98_v56 }
  0xcb   :  { %v100_v59 = vmul.f32 %v99_v58, %v91_v48 }
  0xcd   :  { %102 = vrot.lane.b32.xlu1 %v100_v59, %s222_s22 }
  0xd1   :  { %108 = vperm.xlu1 %163, %v99_v58  }
 0x13f   :  { %v103_v60 = vpop.permute.xlu1 %102 }
 0x140   :  { %v105_v61 = vsub.f32 %v98_v56, %v103_v60 }
 0x142   :  { %124 = vperm.xlu0 %164, %v105_v61  }
 0x150   :  { %v109_v7 = vpop.permute.xlu1 %108 }
 0x151   :  { %v116_v8 = vrot.slane %v109_v7, %v115_v6 }
 0x153   :  { %v118_v9 = vmul.f32 %v116_v8, %v252_v0  ;;  %v119_v11 = vmul.f32 %v116_v8, %v254_v1  ;;  %v120_v13 = vmul.f32 %v116_v8, %v256_v2  ;;  %v121_v14 = vmul.f32 %v116_v8, %v273_v12 }
 0x1c1   :  { %v125_v10 = vpop.permute.xlu0 %124 }
 0x1c2   :  { %v132_v15 = vrot.slane %v125_v10, %v115_v6 }
 0x1c4   :  { %v134_v16 = vadd.f32 %v132_v15, %v118_v9  ;;  %v135_v17 = vadd.f32 %v132_v15, %v119_v11  ;;  %v136_v18 = vadd.f32 %v132_v15, %v120_v13  ;;  %v137_v19 = vadd.f32 %v132_v15, %v121_v14 }
 0x1c6   :  { %138 = vst [vmem:[#allocation5] sm:$0xff] %v134_v16  ;;  %139 = vst [vmem:[#allocation5 + $0x8] sm:$0xff] %v135_v17 }
 0x1c7   :  { %140 = vst [vmem:[#allocation5 + $0x10] sm:$0xff] %v136_v18  ;;  %141 = vst [vmem:[#allocation5 + $0x18] sm:$0xff] %v137_v19 }
 0x1c8   :  { %204 = shalt.err (!%p201_p12)
}
 0x1c9   :  { %s205_s27 = scalar_lea.hbm %s317_s2, 512 }
 0x1ca   :  { %p206_p13 = scmp.ne.s32.totalorder %s317_s2, %s205_s27  ;;  %p209_p0 = scmp.lt.u32.totalorder %s205_s27, %s317_s2 }
 0x1cc   :  { %p211_p1 = pnand %p209_p0, %p206_p13 }
 0x1ce   :  { %214 = shalt.err (!%p211_p1)
}
 0x1cf   :  { %151 = dma.vmem_to_hbm [thread:$0]  %s149_s23, 512, %s317_s2, [#allocation4]  }
 0x1d0   :  { %217 = dma.done.wait [#allocation4], 512  }
 0x1d1   :  { %218 = vsyncadd [#allocation4], 4294966784 }
 0x1d2   :  { %155 = vsyncpa [#allocation3], 1 }
 0x1d3   :  { %156 = vsyncpa [#allocation4], 1 }

</bundles_post_ra>
